<compile_context>
chip_gen: v7x
topology: tpu7x:2x2x1
jax: 0.10.0
libtpu: 0.0.40
codegen_flags: <defaults>
</compile_context>

<pallas_src>
import functools

import jax
import jax.numpy as jnp
from jax.experimental import pallas as pl
from jax.experimental.pallas import tpu as pltpu


# ----------------------------- kernel body ---------------------------------

_NT_DIMS = (((1,), (1,)), ((), ()))   # contract last dim of both operands: A @ B^T


def _make_adapter_kernel(skip_connect: bool):
    def kernel(x_ref, w1_ref, b1_ref, w2_ref, b2_ref, o_ref):
        x = x_ref[...]                                          # [ct, D], native dtype
        # fc1: [ct, D] x [H, D]^T -> [ct, H]; native-dtype MXU operands, f32 accum.
        h = jax.lax.dot_general(x, w1_ref[...], _NT_DIMS,
                                preferred_element_type=jnp.float32)
        h = h + b1_ref[...].astype(jnp.float32)                 # (1, H) row broadcast
        # exact erf GELU (torch.nn.GELU default), in f32.
        h = 0.5 * h * (1.0 + jax.lax.erf(h * 0.7071067811865476))
        # fc2: [ct, H] x [D, H]^T -> [ct, D]
        y = jax.lax.dot_general(h.astype(w2_ref.dtype), w2_ref[...], _NT_DIMS,
                                preferred_element_type=jnp.float32)
        y = y + b2_ref[...].astype(jnp.float32)                 # (1, D) row broadcast
        if skip_connect:
            y = y + x.astype(jnp.float32)                       # residual in f32
        o_ref[...] = y.astype(o_ref.dtype)
    return kernel


# ----------------------------- tiling helpers -------------------------------

def _round_up(a, b):
    return -(-a // b) * b


def _cdiv(a, b):
    return -(-a // b)


@functools.lru_cache(maxsize=1)
def _vmem_capacity_bytes():
    """Per-core VMEM capacity; conservative (v7x-sized) fallback if unknown."""
    try:
        info = pltpu.get_tpu_info()
        for name in ("vmem_capacity_bytes", "vmem_size_bytes", "vmem_bytes"):
            v = getattr(info, name, None)
            if v:
                return int(v)
    except Exception:
        pass
    return 64 * 1024 * 1024


def _vmem_step_bytes(D, H, ct, in_item, w_item):
    io = 2 * 2 * ct * D * in_item              # double-buffered x block in + y block out
    wts = 2 * (2 * D * H + D + H) * w_item     # weights + biases (default double-buffered)
    tmp = (ct * H + 2 * ct * D) * 4            # f32 intermediates (h, y, residual cast)
    return io + wts + tmp


def _choose_row_tile(N, D, H, in_item, w_item, budget, min_steps, cap=2048):
    """Largest row tile (multiple of 128) fitting the VMEM budget with >= min_steps
    grid steps; falls back to 128 (max pipelining) when N is too small."""
    n8 = _round_up(max(N, 1), 8)
    if n8 <= 128:
        return n8                              # one small block covering all rows
    cap = min(cap, _round_up(N, 128))
    best = None
    ct = 128
    while ct <= cap:
        if (_vmem_step_bytes(D, H, ct, in_item, w_item) <= budget
                and _cdiv(N, ct) >= min_steps):
            best = ct
        ct += 128
    return best if best is not None else 128


# ----------------------------- wrapper --------------------------------------

@functools.partial(jax.jit, static_argnames=("skip_connect", "row_tile"))
def adapter_forward(x, w1, b1, w2, b2, *, skip_connect=True, row_tile=None):
    """x: [..., D].  w1: [H, D] (fc1.weight), b1: [H], w2: [D, H] (fc2.weight), b2: [D]."""
    orig_shape = x.shape
    D = orig_shape[-1]
    H = w1.shape[0]
    assert w1.shape == (H, D) and w2.shape == (D, H)
    assert b1.shape == (H,) and b2.shape == (D,)

    x2 = x.reshape(-1, D)                      # bitcast view, no HBM copy
    N = x2.shape[0]

    in_item = jnp.dtype(x.dtype).itemsize
    w_item = jnp.dtype(w1.dtype).itemsize

    # Generation-aware budgets: 64-MiB-VMEM parts (v7x class) get a tighter
    # budget and more grid steps (2 TensorCores); 128-MiB parts (v5e/v6e) get
    # larger tiles so per-step overhead shrinks.
    cap_bytes = _vmem_capacity_bytes()
    small_vmem = cap_bytes <= 80 * 1024 * 1024
    budget = (22 if small_vmem else 48) * 1024 * 1024
    limit_cap = (48 if small_vmem else 96) * 1024 * 1024
    min_steps = 8 if small_vmem else 4

    if row_tile is None:
        ct = _choose_row_tile(N, D, H, in_item, w_item, budget, min_steps)
    else:
        ct = max(8, _round_up(int(row_tile), 8))
    steps = _cdiv(N, ct)

    need = _vmem_step_bytes(D, H, ct, in_item, w_item)
    vmem_limit = int(min(max(32 * 1024 * 1024, int(1.5 * need)), limit_cap))

    b1_row = b1.reshape(1, H)
    b2_row = b2.reshape(1, D)

    flops = 4 * N * D * H                      # two matmuls
    bytes_accessed = (2 * N * D) * in_item + (2 * D * H + D + H) * w_item  # in + out + weights

    out = pl.pallas_call(
        _make_adapter_kernel(bool(skip_connect)),
        out_shape=jax.ShapeDtypeStruct((N, D), x.dtype),
        grid_spec=pltpu.PrefetchScalarGridSpec(
            num_scalar_prefetch=0,
            grid=(steps,),
            in_specs=[
                pl.BlockSpec((ct, D), lambda i: (i, 0)),   # x rows, streamed
                pl.BlockSpec((H, D), lambda i: (0, 0)),    # W1, resident (constant index)
                pl.BlockSpec((1, H), lambda i: (0, 0)),    # b1, resident
                pl.BlockSpec((D, H), lambda i: (0, 0)),    # W2, resident
                pl.BlockSpec((1, D), lambda i: (0, 0)),    # b2, resident
            ],
            out_specs=pl.BlockSpec((ct, D), lambda i: (i, 0)),
        ),
        compiler_params=pltpu.CompilerParams(
            dimension_semantics=("parallel",),
            vmem_limit_bytes=vmem_limit),
        cost_estimate=pl.CostEstimate(
            flops=flops,
            transcendentals=N * H,
            bytes_accessed=bytes_accessed),
    )(x2, w1, b1_row, w2, b2_row)

    return out.reshape(orig_shape)


# ----------------------------- reference & test -----------------------------

def _reference(x, w1, b1, w2, b2, skip_connect=True):
    h = jnp.einsum("...d,hd->...h", x, w1) + b1
    h = 0.5 * h * (1.0 + jax.lax.erf(h / jnp.sqrt(2.0)))
    y = jnp.einsum("...h,dh->...d", h, w2) + b2
    return x + y if skip_connect else y


if __name__ == "__main__":
    key = jax.random.PRNGKey(0)
    kx, kw1, kb1, kw2, kb2, kxr = jax.random.split(key, 6)

    # Module config: D_features=32, mlp_ratio=0.25 -> hidden=8 (small test shape).
    B, S, D = 2, 8, 32
    H = max(1, int(D * 0.25))

    x = jax.random.normal(kx, (B, S, D), dtype=jnp.float32)
    # torch nn.Linear(D, H).weight has shape (H, D); keep the native layout.
    w1 = jax.random.normal(kw1, (H, D), dtype=jnp.float32) * 0.05
    b1 = jax.random.normal(kb1, (H,), dtype=jnp.float32) * 0.05
    w2 = jax.random.normal(kw2, (D, H), dtype=jnp.float32) * 0.05
    b2 = jax.random.normal(kb2, (D,), dtype=jnp.float32) * 0.05

    # skip_connect=True (S_Adapter), single-block grid.
    out = jax.block_until_ready(adapter_forward(x, w1, b1, w2, b2, skip_connect=True))
    ref = _reference(x, w1, b1, w2, b2, True)
    assert out.shape == x.shape
    assert jnp.allclose(out, ref, atol=1e-4, rtol=1e-4), "mismatch (skip_connect=True)"

    # skip_connect=False (MLP_Adapter / T_Adapter).
    out2 = jax.block_until_ready(adapter_forward(x, w1, b1, w2, b2, skip_connect=False))
    ref2 = _reference(x, w1, b1, w2, b2, False)
    assert jnp.allclose(out2, ref2, atol=1e-4, rtol=1e-4), "mismatch (skip_connect=False)"

    # Multi-step grid with a ragged final block (N = 3*100 = 300 rows -> 3 blocks of 128).
    xr = jax.random.normal(kxr, (3, 100, D), dtype=jnp.float32)
    out3 = jax.block_until_ready(adapter_forward(xr, w1, b1, w2, b2, skip_connect=True))
    ref3 = _reference(xr, w1, b1, w2, b2, True)
    assert out3.shape == xr.shape
    assert jnp.allclose(out3, ref3, atol=1e-4, rtol=1e-4), "mismatch (ragged multi-step)"

    print("KERNEL_OK")
</pallas_src>

<mosaic_0001>
module attributes {stable_mosaic.version = 11 : i64} {
  func.func @kernel(%arg0: i32, %arg1: memref<16x32xf32, #tpu.memory_space<vmem>>, %arg2: memref<8x32xf32, #tpu.memory_space<vmem>>, %arg3: memref<1x8xf32, #tpu.memory_space<vmem>>, %arg4: memref<32x8xf32, #tpu.memory_space<vmem>>, %arg5: memref<1x32xf32, #tpu.memory_space<vmem>>, %arg6: memref<16x32xf32, #tpu.memory_space<vmem>>) attributes {dimension_semantics = [#tpu.dimension_semantics<parallel>], iteration_bounds = array<i64: 1>, scalar_prefetch = 0 : i64, scratch_operands = 0 : i64, tpu.core_type = #tpu.core_type<tc>, window_params = [{transform_indices = @transform_0, window_bounds = array<i64: 16, 32>}, {pipeline_mode = #tpu.pipeline_mode<synchronous>, transform_indices = @transform_1, window_bounds = array<i64: 8, 32>}, {pipeline_mode = #tpu.pipeline_mode<synchronous>, transform_indices = @transform_2, window_bounds = array<i64: 1, 8>}, {pipeline_mode = #tpu.pipeline_mode<synchronous>, transform_indices = @transform_3, window_bounds = array<i64: 32, 8>}, {pipeline_mode = #tpu.pipeline_mode<synchronous>, transform_indices = @transform_4, window_bounds = array<i64: 1, 32>}, {transform_indices = @transform_5, window_bounds = array<i64: 16, 32>}]} {
    %c0 = arith.constant 0 : index
    %c0_0 = arith.constant 0 : index
    %0 = vector.load %arg1[%c0, %c0_0] : memref<16x32xf32, #tpu.memory_space<vmem>>, vector<16x32xf32>
    %c0_1 = arith.constant 0 : index
    %c0_2 = arith.constant 0 : index
    %1 = vector.load %arg2[%c0_1, %c0_2] : memref<8x32xf32, #tpu.memory_space<vmem>>, vector<8x32xf32>
    %cst = arith.constant dense<0.000000e+00> : vector<16x8xf32>
    %2 = tpu.matmul %0, %1, %cst {dimension_numbers = #tpu.dot_dimension_numbers<[1], [1], [0], [0], [0, 0, 1, 0], [], []>} : vector<16x32xf32>, vector<8x32xf32>, vector<16x8xf32> -> vector<16x8xf32>
    %c0_3 = arith.constant 0 : index
    %c0_4 = arith.constant 0 : index
    %3 = vector.load %arg3[%c0_3, %c0_4] : memref<1x8xf32, #tpu.memory_space<vmem>>, vector<1x8xf32>
    %4 = vector.broadcast %3 : vector<1x8xf32> to vector<16x8xf32>
    %5 = arith.addf %2, %4 : vector<16x8xf32>
    %cst_5 = arith.constant 5.000000e-01 : f32
    %6 = vector.broadcast %cst_5 : f32 to vector<16x8xf32>
    %7 = arith.mulf %6, %5 : vector<16x8xf32>
    %cst_6 = arith.constant 0.707106769 : f32
    %8 = vector.broadcast %cst_6 : f32 to vector<16x8xf32>
    %9 = arith.mulf %5, %8 : vector<16x8xf32>
    %10 = math.erf %9 : vector<16x8xf32>
    %cst_7 = arith.constant 1.000000e+00 : f32
    %11 = vector.broadcast %cst_7 : f32 to vector<16x8xf32>
    %12 = arith.addf %11, %10 : vector<16x8xf32>
    %13 = arith.mulf %7, %12 : vector<16x8xf32>
    %c0_8 = arith.constant 0 : index
    %c0_9 = arith.constant 0 : index
    %14 = vector.load %arg4[%c0_8, %c0_9] : memref<32x8xf32, #tpu.memory_space<vmem>>, vector<32x8xf32>
    %cst_10 = arith.constant dense<0.000000e+00> : vector<16x32xf32>
    %15 = tpu.matmul %13, %14, %cst_10 {dimension_numbers = #tpu.dot_dimension_numbers<[1], [1], [0], [0], [0, 0, 1, 0], [], []>} : vector<16x8xf32>, vector<32x8xf32>, vector<16x32xf32> -> vector<16x32xf32>
    %c0_11 = arith.constant 0 : index
    %c0_12 = arith.constant 0 : index
    %16 = vector.load %arg5[%c0_11, %c0_12] : memref<1x32xf32, #tpu.memory_space<vmem>>, vector<1x32xf32>
    %17 = vector.broadcast %16 : vector<1x32xf32> to vector<16x32xf32>
    %18 = arith.addf %15, %17 : vector<16x32xf32>
    %19 = arith.addf %18, %0 : vector<16x32xf32>
    %c0_13 = arith.constant 0 : index
    %c0_14 = arith.constant 0 : index
    %20 = vector.load %arg6[%c0_13, %c0_14] : memref<16x32xf32, #tpu.memory_space<vmem>>, vector<16x32xf32>
    tpu.vector_store %arg6[%c0_13, %c0_14], %19 {strides = array<i32>} : memref<16x32xf32, #tpu.memory_space<vmem>>, vector<16x32xf32>,
    return
  }
  func.func @transform_0(%arg0: i32) -> (i32, i32) {
    %c0_i32 = arith.constant 0 : i32
    %c0_i32_0 = arith.constant 0 : i32
    return %arg0, %c0_i32 : i32, i32
  }
  func.func @transform_1(%arg0: i32) -> (i32, i32) {
    %c0_i32 = arith.constant 0 : i32
    %c0_i32_0 = arith.constant 0 : i32
    %c0_i32_1 = arith.constant 0 : i32
    return %c0_i32, %c0_i32_0 : i32, i32
  }
  func.func @transform_2(%arg0: i32) -> (i32, i32) {
    %c0_i32 = arith.constant 0 : i32
    %c0_i32_0 = arith.constant 0 : i32
    %c0_i32_1 = arith.constant 0 : i32
    return %c0_i32, %c0_i32_0 : i32, i32
  }
  func.func @transform_3(%arg0: i32) -> (i32, i32) {
    %c0_i32 = arith.constant 0 : i32
    %c0_i32_0 = arith.constant 0 : i32
    %c0_i32_1 = arith.constant 0 : i32
    return %c0_i32, %c0_i32_0 : i32, i32
  }
  func.func @transform_4(%arg0: i32) -> (i32, i32) {
    %c0_i32 = arith.constant 0 : i32
    %c0_i32_0 = arith.constant 0 : i32
    %c0_i32_1 = arith.constant 0 : i32
    return %c0_i32, %c0_i32_0 : i32, i32
  }
  func.func @transform_5(%arg0: i32) -> (i32, i32) {
    %c0_i32 = arith.constant 0 : i32
    %c0_i32_0 = arith.constant 0 : i32
    return %arg0, %c0_i32 : i32, i32
  }
}

</mosaic_0001>

<bundles_post_ra>
// kernel: adapter_forward.1
= control target key start
LH: loop header
LB: loop body
LE: loop exit
PB: predicated region body
PF: predicated region fallthrough
CT: control target
= control target key end

     0   :  { %vm31_vm0 = vcmask 261120   ;;  %s412_s0 = inlined_call_operand.vmem [shape: f32[16,32], index: 0, kind: input, shape index: {}]   ;;  %s413_s1 = inlined_call_operand.vmem [shape: f32[8,32], index: 1, kind: input, shape index: {}]   ;;  %s414_s2 = inlined_call_operand.vmem [shape: f32[1,8], index: 2, kind: input, shape index: {}]   ;;  %s415_s3 = inlined_call_operand.vmem [shape: f32[32,8], index: 3, kind: input, shape index: {}]   ;;  %s416_s4 = inlined_call_operand.vmem [shape: f32[1,32], index: 4, kind: input, shape index: {}]   ;;  %s417_s5 = inlined_call_operand.hbm [shape: f32[16,32], index: 5, kind: output, shape index: {}]  }
   0x1   :  { %v23_v0 = vld [vmem:[%s413_s1] sm:$0xff] }
   0x2   :  { %v21_v1 = vld [vmem:[%s412_s0] sm:$0xff]  ;;  %271 = vmatprep.subr.msk.mxu0 %vm31_vm0, %v23_v0 }
   0x3   :  { %273 = vmatprep.mubr.msk.f32.mxu0 %vm31_vm0, %v21_v1 }
   0x4   :  { %10 = vsyncpa [#allocation3], 0  ;;  %272 = vmatpush3.xpose.msk.msra.mxu0 %vm31_vm0, %v23_v0  ;;  %v22_v2 = vld [vmem:[%s412_s0 + $0x8] sm:$0xff]  ;;  %v126_v3 = vld [vmem:[%s415_s3] sm:$0xff]  ;;  %vm137_vm1 = vcmask 64512   ;;  %s330_s7 = smov [#allocation2]  }
   0x5   :  { %v127_v4 = vld [vmem:[%s415_s3 + $0x8] sm:$0xff]  ;;  %vm288_vm2 = vmpackc.low %vm137_vm1, %vm137_vm1  ;;  %v128_v6 = vld [vmem:[%s415_s3 + $0x10] sm:$0xff]  ;;  %s240_s8 = sshll.u32 %s330_s7, 4  ;;  %s241_s8 = int_to_ptr.vmem [resolvable:$true] %s240_s8 }
   0x6   :  { %v287_v5 = vpack.c.bf16 %v127_v4, %v126_v3  ;;  %v129_v7 = vld [vmem:[%s415_s3 + $0x18] sm:$0xff]  ;;  %v251_v9 = vld [vmem:[%s414_s2] ss:$0 sm:$0xff]  ;;  %s306_s9 = scalar_lea.vmem %s241_s8, 256  ;;  %p311_p1 = scmp.lt.s32.totalorder %s241_s8, %s241_s8 }
   0x7   :  { %274 = vmatmul.mubr.msk.f32.vlgmr.msra.gmra.mrb[0].mxu0 %vm31_vm0, %v22_v2  ;;  %v293_v8 = vpack.c.bf16 %v129_v7, %v128_v6  ;;  %v255_v24 = vld [vmem:[%s416_s4] ss:$0 sm:$0xff]  ;;  %p307_p0 = scmp.ne.s32.totalorder %s241_s8, %s306_s9  ;;  %p312_p2 = scmp.lt.s32.totalorder %s306_s9, %s306_s9 }
   0x8   :  { %289 = vmatprep.subr.msk.bf16.mxu1 %vm288_vm2, %v287_v5 }
   0x9   :  { %292 = vmatpush3.bf16.xpose.msk.msra.mxu1 %vm288_vm2, %v287_v5  ;;  %p313_p3 = por %p312_p2, %p311_p1 }
   0xa   :  { %295 = vmatprep.subr.msk.bf16.mxu1 %vm288_vm2, %v293_v8 }
   0xb   :  { %p314_p4 = pnand %p313_p3, %p307_p0 }
  0x11   :  { %298 = vmatpush3.bf16.xpose.msk.msra.mxu1 %vm288_vm2, %v293_v8 }
  0xda   :  { %v275_v10 = vpop.f32.mrb[0].mxu0 }
  0xdb   :  { %v113_v11 = vadd.f32 %v275_v10, %v251_v9  ;;  %v107_v12 = vpop.f32.mrb[1].mxu0 }
  0xdc   :  { %v108_v13 = vadd.f32 %v251_v9, %v107_v12 }
  0xdd   :  { %v119_v14 = vmul.f32 0.70710677, %v113_v11  ;;  %v117_v21 = vmul.f32 0.5, %v113_v11 }
  0xde   :  { %v118_v15 = vmul.f32 0.70710677, %v108_v13  ;;  %v116_v19 = vmul.f32 0.5, %v108_v13 }
  0xdf   :  { %302 = verf.f32 %v119_v14 }
  0xe0   :  { %304 = verf.f32 %v118_v15 }
  0xe9   :  { %v303_v16 = vpop.eup %302 }
  0xea   :  { %v305_v17 = vpop.eup %304  ;;  %v123_v18 = vadd.f32 1.0, %v303_v16 }
  0xeb   :  { %v122_v20 = vadd.f32 1.0, %v305_v17 }
  0xec   :  { %v125_v23 = vmul.f32 %v123_v18, %v117_v21 }
  0xed   :  { %v124_v22 = vmul.f32 %v122_v20, %v116_v19 }
  0xef   :  { %284 = vmatprep.mubr.msk.f32.mxu1 %vm137_vm1, %v124_v22 }
  0xf0   :  { %285 = vmatmul.mubr.msk.f32.vlgmr.msra.gmra.mrb[0].mxu1 %vm137_vm1, %v125_v23 }
 0x1c3   :  { %v286_v25 = vpop.f32.mrb[0].mxu1 }
 0x1c4   :  { %v228_v26 = vadd.f32 %v286_v25, %v255_v24  ;;  %v222_v27 = vpop.f32.mrb[1].mxu1 }
 0x1c5   :  { %v223_v28 = vadd.f32 %v255_v24, %v222_v27 }
 0x1c6   :  { %v232_v29 = vadd.f32 %v228_v26, %v22_v2 }
 0x1c7   :  { %v231_v30 = vadd.f32 %v223_v28, %v21_v1 }
 0x1c8   :  { %234 = vst.msk [vmem:[#allocation2 + $0x8] sm:$0xff] %vm31_vm0, %v232_v29 }
 0x1c9   :  { %233 = vst.msk [vmem:[#allocation2] sm:$0xff] %vm31_vm0, %v231_v30 }
 0x1ca   :  { %317 = shalt.err (!%p314_p4)
}
 0x1cb   :  { %s318_s11 = scalar_lea.hbm %s417_s5, 256 }
 0x1cc   :  { %p319_p5 = scmp.ne.s32.totalorder %s417_s5, %s318_s11  ;;  %p322_p6 = scmp.lt.u32.totalorder %s318_s11, %s417_s5 }
 0x1ce   :  { %p324_p7 = pnand %p322_p6, %p319_p5 }
 0x1d0   :  { %327 = shalt.err (!%p324_p7)
}
 0x1d1   :  { %s331_s16 = smov 128   ;;  %s332_s17 = smov 8  }
 0x1d2   :  { %246 = dma.vmem_to_hbm [thread:$0]  %s241_s8, 256, %s417_s5, [#allocation3], %s331_s16, %s331_s16, %s332_s17  }
 0x1d3   :  { %328 = dma.done.wait [#allocation3], 256  }
 0x1d4   :  { %329 = vsyncadd [#allocation3], 4294967040 }
 0x1d5   :  { %250 = vsyncpa [#allocation3], 1 }

</bundles_post_ra>
